<compile_context>
chip_gen: v5e
topology: v5e:2x2
jax: 0.10.0
libtpu: 0.0.40
codegen_flags: <defaults>
</compile_context>

<pallas_src>
import functools

import jax
import jax.numpy as jnp
from jax.experimental import pallas as pl
from jax.experimental.pallas import tpu as pltpu


# ---------------------------------------------------------------------------
# Fused kernel: gating + propagation + (mean*fuse*gather) + score + loss
# ---------------------------------------------------------------------------
def _fused_kernel(emb_ref, wpack_ref, bpack_ref, gbig_ref, idx_ref, lab_ref,
                  scores_ref, loss_ref, x_scratch, *,
                  n_layers, n_diseases, n_total, wd, wr, pos_weight):
    d = emb_ref.shape[1]                     # latent_dim
    bsz = lab_ref.shape[0]                   # batch

    ego = emb_ref[...]                                                  # (N, D)

    # --- self-gating, packed into one MXU pass: Z = ego @ [Wd|Wr] + [bd|br] ---
    z = jnp.dot(ego, wpack_ref[...],
                preferred_element_type=jnp.float32) + bpack_ref[...]    # (N, 2D)
    row = jax.lax.broadcasted_iota(jnp.int32, (n_total, d), 0)
    is_disease = row < n_diseases
    z_sel = jnp.where(is_disease, z[:, :d], z[:, d:])                   # (N, D)
    gated = ego * jax.nn.sigmoid(z_sel)

    # --- stack [ego; gated] at sublane-aligned offsets (0 and N) -------------
    x_scratch[0:n_total, :] = ego
    x_scratch[n_total:2 * n_total, :] = gated

    # --- n_layers of propagation: one block-diagonal matmul per layer --------
    # rows [0, N)   propagate with G   (plain branch)
    # rows [N, 2N)  propagate with G2  (gated branch)
    x = x_scratch[...]                                                  # (2N, D)
    acc = x
    g = gbig_ref[...]
    for _ in range(n_layers):
        x = jnp.dot(g, x, preferred_element_type=jnp.float32)
        acc = acc + x

    # --- gather + layer-mean + MACR fuse folded into ONE MXU matmul ----------
    #   fused_batch[i] = w_i/(L+1) * acc_plain[idx_i] + (1-w_i)/(L+1) * acc_gated[idx_i]
    # idx_ref = [diseases ; n_diseases + drugs]  (2B, 1) int32
    inv_lp1 = 1.0 / float(n_layers + 1)
    lane = jax.lax.broadcasted_iota(jnp.int32, (2 * bsz, 2 * n_total), 1)
    brow = jax.lax.broadcasted_iota(jnp.int32, (2 * bsz, 2 * n_total), 0)
    w_row = jnp.where(brow < bsz, jnp.float32(wd), jnp.float32(wr))
    idx = idx_ref[...]                                                  # (2B, 1)
    gmat = (jnp.where(lane == idx, w_row * inv_lp1, 0.0)
            + jnp.where(lane == idx + n_total, (1.0 - w_row) * inv_lp1, 0.0))
    sel = jnp.dot(gmat, acc, preferred_element_type=jnp.float32)        # (2B, D)
    de = sel[0:bsz, :]                       # batch disease embeddings (B, D)
    re = sel[bsz:2 * bsz, :]                 # batch drug embeddings    (B, D)

    # --- scoring + MACR bias branch + weighted BCE loss ----------------------
    lab = lab_ref[...]                                                  # (B, 1)
    scores = jnp.sum(de * re, axis=1, keepdims=True)                    # (B, 1)
    sd = jnp.sum(jax.nn.sigmoid(de), axis=1, keepdims=True)
    sr = jnp.sum(jax.nn.sigmoid(re), axis=1, keepdims=True)
    scores_bias = scores * sd * sr

    p = jax.nn.sigmoid(scores)
    pb = jax.nn.sigmoid(scores_bias)
    weight = jnp.float32(pos_weight) * lab + 1.0 - lab

    def bce(pred):
        # torch.BCELoss semantics: log clamped at -100, weighted, mean-reduced
        logp = jnp.maximum(jnp.log(pred), -100.0)
        log1 = jnp.maximum(jnp.log(1.0 - pred), -100.0)
        per = weight * (-(lab * logp + (1.0 - lab) * log1))
        return jnp.mean(per, axis=(0, 1), keepdims=True)                # (1, 1)

    loss = bce(p) + 0.1 * bce(pb)
    scores_ref[...] = p.astype(scores_ref.dtype)
    loss_ref[...] = loss.astype(loss_ref.dtype)


# ---------------------------------------------------------------------------
# Full forward (mirrors LightGCN_MACR.forward) — one pallas_call.
# ---------------------------------------------------------------------------
def lightgcn_macr_forward(params, G, G2, diseases, drugs, labels, *,
                          n_diseases, n_layers, wd, wr, pos_weight):
    dis_emb = params["disease_embedding"]     # [n_diseases, D]
    drug_emb = params["drug_embedding"]       # [n_drugs, D]
    n_drugs, d = drug_emb.shape
    n_total = n_diseases + n_drugs
    bsz = diseases.shape[0]

    # one-time glue: ego table, packed gating weights, block-diag graph, indices
    emb = jnp.concatenate([dis_emb, drug_emb], axis=0)                  # (N, D)
    wpack = jnp.concatenate([params["Wd"], params["Wr"]], axis=1)       # (D, 2D)
    bpack = jnp.concatenate([params["bd"], params["br"]], axis=1)       # (1, 2D)

    zeros = jnp.zeros((n_total, n_total), jnp.float32)
    gbig = jnp.block([[G, zeros], [zeros, G2]])                         # (2N, 2N)

    idx = jnp.concatenate(
        [diseases.astype(jnp.int32),
         drugs.astype(jnp.int32) + n_diseases]).reshape(2 * bsz, 1)
    lab = labels.reshape(bsz, 1).astype(jnp.float32)

    kernel = functools.partial(
        _fused_kernel, n_layers=n_layers, n_diseases=n_diseases,
        n_total=n_total, wd=wd, wr=wr, pos_weight=pos_weight)

    scores, loss = pl.pallas_call(
        kernel,
        out_shape=(
            jax.ShapeDtypeStruct((bsz, 1), jnp.float32),
            jax.ShapeDtypeStruct((1, 1), jnp.float32),
        ),
        grid=(1,),
        in_specs=[
            pl.BlockSpec((n_total, d), lambda i: (0, 0)),
            pl.BlockSpec((d, 2 * d), lambda i: (0, 0)),
            pl.BlockSpec((1, 2 * d), lambda i: (0, 0)),
            pl.BlockSpec((2 * n_total, 2 * n_total), lambda i: (0, 0)),
            pl.BlockSpec((2 * bsz, 1), lambda i: (0, 0)),
            pl.BlockSpec((bsz, 1), lambda i: (0, 0)),
        ],
        out_specs=(
            pl.BlockSpec((bsz, 1), lambda i: (0, 0)),
            pl.BlockSpec((1, 1), lambda i: (0, 0)),
        ),
        scratch_shapes=[pltpu.VMEM((2 * n_total, d), jnp.float32)],
        compiler_params=pltpu.CompilerParams(
            dimension_semantics=("arbitrary",)),
    )(emb, wpack, bpack, gbig, idx, lab)

    return loss[0, 0], scores[:, 0]


# ---------------------------------------------------------------------------
# Graph construction (plain JAX glue — mirrors getSparseGraph / getSparseGraph2)
# ---------------------------------------------------------------------------
def normalize_adj(adj):
    rowsum = jnp.sum(adj, axis=1)
    rowsum = jnp.where(rowsum == 0.0, 1.0, rowsum)
    d_inv = rowsum ** -0.5
    d_inv = jnp.where(jnp.isinf(d_inv), 0.0, d_inv)
    return d_inv[:, None] * adj * d_inv[None, :]


if __name__ == "__main__":
    # small synthetic config
    n_diseases, n_drugs = 24, 40
    latent_dim = 32
    n_layers = 2
    batch_size = 8
    wd, wr = 0.7, 0.8
    pos_weight = 2.0
    N = n_diseases + n_drugs

    key = jax.random.PRNGKey(0)
    ks = jax.random.split(key, 12)

    # deterministic parameter init (shapes match the torch module's __init__)
    xav = lambda k, shape: jax.random.normal(k, shape, jnp.float32) * jnp.sqrt(
        2.0 / (shape[0] + shape[1]))
    params = {
        "disease_embedding": jax.random.normal(ks[0], (n_diseases, latent_dim), jnp.float32),
        "drug_embedding": jax.random.normal(ks[1], (n_drugs, latent_dim), jnp.float32),
        "Wd": xav(ks[2], (latent_dim, latent_dim)),
        "bd": xav(ks[3], (1, latent_dim)),
        "Wr": xav(ks[4], (latent_dim, latent_dim)),
        "br": xav(ks[5], (1, latent_dim)),
    }
    # TODO(synk): embed_disease_ctrl / embed_drug_ctrl and self.dropout are
    # unused in forward(); omitted.

    # synthetic adjacency data (dense stand-ins for the sparse torch graphs)
    R = jax.random.bernoulli(ks[6], 0.2, (n_diseases, n_drugs)).astype(jnp.float32)
    dis_adj = jax.random.bernoulli(ks[7], 0.2, (n_diseases, n_diseases)).astype(jnp.float32)
    dis_adj = jnp.maximum(dis_adj, dis_adj.T)
    drug_adj = jax.random.bernoulli(ks[8], 0.2, (n_drugs, n_drugs)).astype(jnp.float32)
    drug_adj = jnp.maximum(drug_adj, drug_adj.T)

    adj1 = jnp.zeros((N, N), jnp.float32)
    adj1 = adj1.at[:n_diseases, n_diseases:].set(R)
    adj1 = adj1.at[n_diseases:, :n_diseases].set(R.T)
    G = normalize_adj(adj1)

    adj2 = jnp.zeros((N, N), jnp.float32)
    adj2 = adj2.at[:n_diseases, :n_diseases].set(dis_adj)
    adj2 = adj2.at[n_diseases:, n_diseases:].set(drug_adj)
    G2 = normalize_adj(adj2)

    # batch
    diseases = jax.random.randint(ks[9], (batch_size,), 0, n_diseases, jnp.int32)
    drugs = jax.random.randint(ks[10], (batch_size,), 0, n_drugs, jnp.int32)
    labels = jax.random.bernoulli(ks[11], 0.5, (batch_size,)).astype(jnp.float32)

    fwd = jax.jit(functools.partial(
        lightgcn_macr_forward,
        n_diseases=n_diseases, n_layers=n_layers,
        wd=wd, wr=wr, pos_weight=pos_weight))

    loss, scores = fwd(params, G, G2, diseases, drugs, labels)
    jax.block_until_ready((loss, scores))
    assert scores.shape == (batch_size,)
    assert jnp.isfinite(loss) and bool(jnp.all(jnp.isfinite(scores)))
    print("KERNEL_OK")
</pallas_src>

<mosaic_0001>
module attributes {stable_mosaic.version = 11 : i64} {
  func.func @_fused_kernel(%arg0: i32, %arg1: memref<64x32xf32, #tpu.memory_space<vmem>>, %arg2: memref<32x64xf32, #tpu.memory_space<vmem>>, %arg3: memref<1x64xf32, #tpu.memory_space<vmem>>, %arg4: memref<128x128xf32, #tpu.memory_space<vmem>>, %arg5: memref<16x1xi32, #tpu.memory_space<vmem>>, %arg6: memref<8x1xf32, #tpu.memory_space<vmem>>, %arg7: memref<8x1xf32, #tpu.memory_space<vmem>>, %arg8: memref<1x1xf32, #tpu.memory_space<vmem>>, %arg9: memref<128x32xf32, #tpu.memory_space<vmem>>) attributes {dimension_semantics = [#tpu.dimension_semantics<arbitrary>], iteration_bounds = array<i64: 1>, scalar_prefetch = 0 : i64, scratch_operands = 1 : i64, tpu.core_type = #tpu.core_type<tc>, window_params = [{pipeline_mode = #tpu.pipeline_mode<synchronous>, transform_indices = @transform_0, window_bounds = array<i64: 64, 32>}, {pipeline_mode = #tpu.pipeline_mode<synchronous>, transform_indices = @transform_1, window_bounds = array<i64: 32, 64>}, {pipeline_mode = #tpu.pipeline_mode<synchronous>, transform_indices = @transform_2, window_bounds = array<i64: 1, 64>}, {pipeline_mode = #tpu.pipeline_mode<synchronous>, transform_indices = @transform_3, window_bounds = array<i64: 128, 128>}, {pipeline_mode = #tpu.pipeline_mode<synchronous>, transform_indices = @transform_4, window_bounds = array<i64: 16, 1>}, {pipeline_mode = #tpu.pipeline_mode<synchronous>, transform_indices = @transform_5, window_bounds = array<i64: 8, 1>}, {pipeline_mode = #tpu.pipeline_mode<synchronous>, transform_indices = @transform_6, window_bounds = array<i64: 8, 1>}, {pipeline_mode = #tpu.pipeline_mode<synchronous>, transform_indices = @transform_7, window_bounds = array<i64: 1, 1>}]} {
    %c0 = arith.constant 0 : index
    %c0_0 = arith.constant 0 : index
    %0 = vector.load %arg1[%c0, %c0_0] : memref<64x32xf32, #tpu.memory_space<vmem>>, vector<64x32xf32>
    %c0_1 = arith.constant 0 : index
    %c0_2 = arith.constant 0 : index
    %1 = vector.load %arg2[%c0_1, %c0_2] : memref<32x64xf32, #tpu.memory_space<vmem>>, vector<32x64xf32>
    %cst = arith.constant dense<0.000000e+00> : vector<64x64xf32>
    %2 = tpu.matmul %0, %1, %cst {dimension_numbers = #tpu.dot_dimension_numbers<[1], [0], [0], [1], [0, 0, 1, 1], [], []>} : vector<64x32xf32>, vector<32x64xf32>, vector<64x64xf32> -> vector<64x64xf32>
    %c0_3 = arith.constant 0 : index
    %c0_4 = arith.constant 0 : index
    %3 = vector.load %arg3[%c0_3, %c0_4] : memref<1x64xf32, #tpu.memory_space<vmem>>, vector<1x64xf32>
    %4 = vector.broadcast %3 : vector<1x64xf32> to vector<64x64xf32>
    %5 = arith.addf %2, %4 : vector<64x64xf32>
    %6 = tpu.iota {dimensions = array<i32: 0>} : vector<64x32xi32>
    %c24_i32 = arith.constant 24 : i32
    %7 = vector.broadcast %c24_i32 : i32 to vector<64x32xi32>
    %8 = arith.cmpi slt, %6, %7 : vector<64x32xi32>
    %9 = vector.extract_strided_slice %5 {offsets = [0, 0], sizes = [64, 32], strides = [1, 1]} : vector<64x64xf32> to vector<64x32xf32>
    %10 = vector.extract_strided_slice %5 {offsets = [0, 32], sizes = [64, 32], strides = [1, 1]} : vector<64x64xf32> to vector<64x32xf32>
    %11 = arith.select %8, %9, %10 : vector<64x32xi1>, vector<64x32xf32>
    %12 = arith.negf %11 : vector<64x32xf32>
    %13 = math.exp %12 : vector<64x32xf32>
    %cst_5 = arith.constant 1.000000e+00 : f32
    %14 = vector.broadcast %cst_5 : f32 to vector<64x32xf32>
    %15 = arith.addf %14, %13 : vector<64x32xf32>
    %16 = arith.divf %14, %15 : vector<64x32xf32>
    %17 = arith.mulf %0, %16 : vector<64x32xf32>
    %c0_6 = arith.constant 0 : index
    %c0_7 = arith.constant 0 : index
    %18 = vector.load %arg9[%c0_6, %c0_7] : memref<128x32xf32, #tpu.memory_space<vmem>>, vector<64x32xf32>
    tpu.vector_store %arg9[%c0_6, %c0_7], %0 {strides = array<i32>} : memref<128x32xf32, #tpu.memory_space<vmem>>, vector<64x32xf32>,
    %c64 = arith.constant 64 : index
    %c0_8 = arith.constant 0 : index
    %19 = vector.load %arg9[%c64, %c0_8] : memref<128x32xf32, #tpu.memory_space<vmem>>, vector<64x32xf32>
    tpu.vector_store %arg9[%c64, %c0_8], %17 {strides = array<i32>} : memref<128x32xf32, #tpu.memory_space<vmem>>, vector<64x32xf32>,
    %c0_9 = arith.constant 0 : index
    %c0_10 = arith.constant 0 : index
    %20 = vector.load %arg9[%c0_9, %c0_10] : memref<128x32xf32, #tpu.memory_space<vmem>>, vector<128x32xf32>
    %c0_11 = arith.constant 0 : index
    %c0_12 = arith.constant 0 : index
    %21 = vector.load %arg4[%c0_11, %c0_12] : memref<128x128xf32, #tpu.memory_space<vmem>>, vector<128x128xf32>
    %cst_13 = arith.constant dense<0.000000e+00> : vector<128x32xf32>
    %22 = tpu.matmul %21, %20, %cst_13 {dimension_numbers = #tpu.dot_dimension_numbers<[1], [0], [0], [1], [0, 0, 1, 1], [], []>} : vector<128x128xf32>, vector<128x32xf32>, vector<128x32xf32> -> vector<128x32xf32>
    %23 = arith.addf %20, %22 : vector<128x32xf32>
    %cst_14 = arith.constant dense<0.000000e+00> : vector<128x32xf32>
    %24 = tpu.matmul %21, %22, %cst_14 {dimension_numbers = #tpu.dot_dimension_numbers<[1], [0], [0], [1], [0, 0, 1, 1], [], []>} : vector<128x128xf32>, vector<128x32xf32>, vector<128x32xf32> -> vector<128x32xf32>
    %25 = arith.addf %23, %24 : vector<128x32xf32>
    %26 = tpu.iota {dimensions = array<i32: 1>} : vector<16x128xi32>
    %27 = tpu.iota {dimensions = array<i32: 0>} : vector<16x128xi32>
    %c8_i32 = arith.constant 8 : i32
    %28 = vector.broadcast %c8_i32 : i32 to vector<16x128xi32>
    %29 = arith.cmpi slt, %27, %28 : vector<16x128xi32>
    %cst_15 = arith.constant 0.699999988 : f32
    %cst_16 = arith.constant 8.000000e-01 : f32
    %30 = vector.broadcast %cst_15 : f32 to vector<16x128xf32>
    %31 = vector.broadcast %cst_16 : f32 to vector<16x128xf32>
    %32 = arith.select %29, %30, %31 : vector<16x128xi1>, vector<16x128xf32>
    %c0_17 = arith.constant 0 : index
    %c0_18 = arith.constant 0 : index
    %33 = vector.load %arg5[%c0_17, %c0_18] : memref<16x1xi32, #tpu.memory_space<vmem>>, vector<16x1xi32>
    %34 = vector.broadcast %33 : vector<16x1xi32> to vector<16x128xi32>
    %35 = arith.cmpi eq, %26, %34 : vector<16x128xi32>
    %cst_19 = arith.constant 0.333333343 : f32
    %36 = vector.broadcast %cst_19 : f32 to vector<16x128xf32>
    %37 = arith.mulf %32, %36 : vector<16x128xf32>
    %cst_20 = arith.constant 0.000000e+00 : f32
    %38 = vector.broadcast %cst_20 : f32 to vector<16x128xf32>
    %39 = arith.select %35, %37, %38 : vector<16x128xi1>, vector<16x128xf32>
    %c64_i32 = arith.constant 64 : i32
    %40 = vector.broadcast %c64_i32 : i32 to vector<16x1xi32>
    %41 = arith.addi %33, %40 : vector<16x1xi32>
    %42 = vector.broadcast %41 : vector<16x1xi32> to vector<16x128xi32>
    %43 = arith.cmpi eq, %26, %42 : vector<16x128xi32>
    %cst_21 = arith.constant 1.000000e+00 : f32
    %44 = vector.broadcast %cst_21 : f32 to vector<16x128xf32>
    %45 = arith.subf %44, %32 : vector<16x128xf32>
    %cst_22 = arith.constant 0.333333343 : f32
    %46 = vector.broadcast %cst_22 : f32 to vector<16x128xf32>
    %47 = arith.mulf %45, %46 : vector<16x128xf32>
    %cst_23 = arith.constant 0.000000e+00 : f32
    %48 = vector.broadcast %cst_23 : f32 to vector<16x128xf32>
    %49 = arith.select %43, %47, %48 : vector<16x128xi1>, vector<16x128xf32>
    %50 = arith.addf %39, %49 : vector<16x128xf32>
    %cst_24 = arith.constant dense<0.000000e+00> : vector<16x32xf32>
    %51 = tpu.matmul %50, %25, %cst_24 {dimension_numbers = #tpu.dot_dimension_numbers<[1], [0], [0], [1], [0, 0, 1, 1], [], []>} : vector<16x128xf32>, vector<128x32xf32>, vector<16x32xf32> -> vector<16x32xf32>
    %52 = vector.extract_strided_slice %51 {offsets = [0, 0], sizes = [8, 32], strides = [1, 1]} : vector<16x32xf32> to vector<8x32xf32>
    %53 = vector.extract_strided_slice %51 {offsets = [8, 0], sizes = [8, 32], strides = [1, 1]} : vector<16x32xf32> to vector<8x32xf32>
    %c0_25 = arith.constant 0 : index
    %c0_26 = arith.constant 0 : index
    %54 = vector.load %arg6[%c0_25, %c0_26] : memref<8x1xf32, #tpu.memory_space<vmem>>, vector<8x1xf32>
    %55 = arith.mulf %52, %53 : vector<8x32xf32>
    %cst_27 = arith.constant dense<0.000000e+00> : vector<8xf32>
    %56 = vector.multi_reduction <add>, %55, %cst_27 [1] : vector<8x32xf32> to vector<8xf32>
    %57 = vector.shape_cast %56 : vector<8xf32> to vector<8x1xf32>
    %58 = arith.negf %52 : vector<8x32xf32>
    %59 = math.exp %58 : vector<8x32xf32>
    %cst_28 = arith.constant 1.000000e+00 : f32
    %60 = vector.broadcast %cst_28 : f32 to vector<8x32xf32>
    %61 = arith.addf %60, %59 : vector<8x32xf32>
    %62 = arith.divf %60, %61 : vector<8x32xf32>
    %cst_29 = arith.constant dense<0.000000e+00> : vector<8xf32>
    %63 = vector.multi_reduction <add>, %62, %cst_29 [1] : vector<8x32xf32> to vector<8xf32>
    %64 = vector.shape_cast %63 : vector<8xf32> to vector<8x1xf32>
    %65 = arith.negf %53 : vector<8x32xf32>
    %66 = math.exp %65 : vector<8x32xf32>
    %cst_30 = arith.constant 1.000000e+00 : f32
    %67 = vector.broadcast %cst_30 : f32 to vector<8x32xf32>
    %68 = arith.addf %67, %66 : vector<8x32xf32>
    %69 = arith.divf %67, %68 : vector<8x32xf32>
    %cst_31 = arith.constant dense<0.000000e+00> : vector<8xf32>
    %70 = vector.multi_reduction <add>, %69, %cst_31 [1] : vector<8x32xf32> to vector<8xf32>
    %71 = vector.shape_cast %70 : vector<8xf32> to vector<8x1xf32>
    %72 = arith.mulf %57, %64 : vector<8x1xf32>
    %73 = arith.mulf %72, %71 : vector<8x1xf32>
    %74 = arith.negf %57 : vector<8x1xf32>
    %75 = math.exp %74 : vector<8x1xf32>
    %cst_32 = arith.constant 1.000000e+00 : f32
    %76 = vector.broadcast %cst_32 : f32 to vector<8x1xf32>
    %77 = arith.addf %76, %75 : vector<8x1xf32>
    %78 = arith.divf %76, %77 : vector<8x1xf32>
    %79 = arith.negf %73 : vector<8x1xf32>
    %80 = math.exp %79 : vector<8x1xf32>
    %cst_33 = arith.constant 1.000000e+00 : f32
    %81 = vector.broadcast %cst_33 : f32 to vector<8x1xf32>
    %82 = arith.addf %81, %80 : vector<8x1xf32>
    %83 = arith.divf %81, %82 : vector<8x1xf32>
    %cst_34 = arith.constant 2.000000e+00 : f32
    %84 = vector.broadcast %cst_34 : f32 to vector<8x1xf32>
    %85 = arith.mulf %84, %54 : vector<8x1xf32>
    %cst_35 = arith.constant 1.000000e+00 : f32
    %86 = vector.broadcast %cst_35 : f32 to vector<8x1xf32>
    %87 = arith.addf %85, %86 : vector<8x1xf32>
    %88 = arith.subf %87, %54 : vector<8x1xf32>
    %89 = math.log %78 : vector<8x1xf32>
    %cst_36 = arith.constant -1.000000e+02 : f32
    %90 = vector.broadcast %cst_36 : f32 to vector<8x1xf32>
    %91 = arith.maximumf %89, %90 : vector<8x1xf32>
    %cst_37 = arith.constant 1.000000e+00 : f32
    %92 = vector.broadcast %cst_37 : f32 to vector<8x1xf32>
    %93 = arith.subf %92, %78 : vector<8x1xf32>
    %94 = math.log %93 : vector<8x1xf32>
    %cst_38 = arith.constant -1.000000e+02 : f32
    %95 = vector.broadcast %cst_38 : f32 to vector<8x1xf32>
    %96 = arith.maximumf %94, %95 : vector<8x1xf32>
    %97 = arith.mulf %54, %91 : vector<8x1xf32>
    %cst_39 = arith.constant 1.000000e+00 : f32
    %98 = vector.broadcast %cst_39 : f32 to vector<8x1xf32>
    %99 = arith.subf %98, %54 : vector<8x1xf32>
    %100 = arith.mulf %99, %96 : vector<8x1xf32>
    %101 = arith.addf %97, %100 : vector<8x1xf32>
    %cst_40 = arith.constant 0.000000e+00 : f32
    %102 = vector.broadcast %cst_40 : f32 to vector<8x1xf32>
    %103 = arith.subf %102, %101 : vector<8x1xf32>
    %104 = arith.mulf %88, %103 : vector<8x1xf32>
    %105 = vector.shape_cast %104 : vector<8x1xf32> to vector<1x8x1xf32>
    %cst_41 = arith.constant dense<0.000000e+00> : vector<1xf32>
    %106 = vector.multi_reduction <add>, %105, %cst_41 [1, 2] : vector<1x8x1xf32> to vector<1xf32>
    %107 = vector.shape_cast %106 : vector<1xf32> to vector<1x1x1xf32>
    %108 = vector.extract %107[0, 0, 0] : f32 from vector<1x1x1xf32>
    %109 = vector.broadcast %108 : f32 to vector<1x1xf32>
    %cst_42 = arith.constant 8.000000e+00 : f32
    %110 = vector.broadcast %cst_42 : f32 to vector<1x1xf32>
    %111 = arith.divf %109, %110 : vector<1x1xf32>
    %112 = math.log %83 : vector<8x1xf32>
    %cst_43 = arith.constant -1.000000e+02 : f32
    %113 = vector.broadcast %cst_43 : f32 to vector<8x1xf32>
    %114 = arith.maximumf %112, %113 : vector<8x1xf32>
    %cst_44 = arith.constant 1.000000e+00 : f32
    %115 = vector.broadcast %cst_44 : f32 to vector<8x1xf32>
    %116 = arith.subf %115, %83 : vector<8x1xf32>
    %117 = math.log %116 : vector<8x1xf32>
    %cst_45 = arith.constant -1.000000e+02 : f32
    %118 = vector.broadcast %cst_45 : f32 to vector<8x1xf32>
    %119 = arith.maximumf %117, %118 : vector<8x1xf32>
    %120 = arith.mulf %54, %114 : vector<8x1xf32>
    %cst_46 = arith.constant 1.000000e+00 : f32
    %121 = vector.broadcast %cst_46 : f32 to vector<8x1xf32>
    %122 = arith.subf %121, %54 : vector<8x1xf32>
    %123 = arith.mulf %122, %119 : vector<8x1xf32>
    %124 = arith.addf %120, %123 : vector<8x1xf32>
    %cst_47 = arith.constant 0.000000e+00 : f32
    %125 = vector.broadcast %cst_47 : f32 to vector<8x1xf32>
    %126 = arith.subf %125, %124 : vector<8x1xf32>
    %127 = arith.mulf %88, %126 : vector<8x1xf32>
    %128 = vector.shape_cast %127 : vector<8x1xf32> to vector<1x8x1xf32>
    %cst_48 = arith.constant dense<0.000000e+00> : vector<1xf32>
    %129 = vector.multi_reduction <add>, %128, %cst_48 [1, 2] : vector<1x8x1xf32> to vector<1xf32>
    %130 = vector.shape_cast %129 : vector<1xf32> to vector<1x1x1xf32>
    %131 = vector.extract %130[0, 0, 0] : f32 from vector<1x1x1xf32>
    %132 = vector.broadcast %131 : f32 to vector<1x1xf32>
    %cst_49 = arith.constant 8.000000e+00 : f32
    %133 = vector.broadcast %cst_49 : f32 to vector<1x1xf32>
    %134 = arith.divf %132, %133 : vector<1x1xf32>
    %cst_50 = arith.constant 1.000000e-01 : f32
    %135 = vector.broadcast %cst_50 : f32 to vector<1x1xf32>
    %136 = arith.mulf %135, %134 : vector<1x1xf32>
    %137 = arith.addf %111, %136 : vector<1x1xf32>
    %c0_51 = arith.constant 0 : index
    %c0_52 = arith.constant 0 : index
    %138 = vector.load %arg7[%c0_51, %c0_52] : memref<8x1xf32, #tpu.memory_space<vmem>>, vector<8x1xf32>
    tpu.vector_store %arg7[%c0_51, %c0_52], %78 {strides = array<i32>} : memref<8x1xf32, #tpu.memory_space<vmem>>, vector<8x1xf32>,
    %c0_53 = arith.constant 0 : index
    %c0_54 = arith.constant 0 : index
    %139 = vector.load %arg8[%c0_53, %c0_54] : memref<1x1xf32, #tpu.memory_space<vmem>>, vector<1x1xf32>
    tpu.vector_store %arg8[%c0_53, %c0_54], %137 {strides = array<i32>} : memref<1x1xf32, #tpu.memory_space<vmem>>, vector<1x1xf32>,
    return
  }
  func.func @transform_0(%arg0: i32) -> (i32, i32) {
    %c0_i32 = arith.constant 0 : i32
    %c0_i32_0 = arith.constant 0 : i32
    %c0_i32_1 = arith.constant 0 : i32
    return %c0_i32, %c0_i32_0 : i32, i32
  }
  func.func @transform_1(%arg0: i32) -> (i32, i32) {
    %c0_i32 = arith.constant 0 : i32
    %c0_i32_0 = arith.constant 0 : i32
    %c0_i32_1 = arith.constant 0 : i32
    return %c0_i32, %c0_i32_0 : i32, i32
  }
  func.func @transform_2(%arg0: i32) -> (i32, i32) {
    %c0_i32 = arith.constant 0 : i32
    %c0_i32_0 = arith.constant 0 : i32
    %c0_i32_1 = arith.constant 0 : i32
    return %c0_i32, %c0_i32_0 : i32, i32
  }
  func.func @transform_3(%arg0: i32) -> (i32, i32) {
    %c0_i32 = arith.constant 0 : i32
    %c0_i32_0 = arith.constant 0 : i32
    %c0_i32_1 = arith.constant 0 : i32
    return %c0_i32, %c0_i32_0 : i32, i32
  }
  func.func @transform_4(%arg0: i32) -> (i32, i32) {
    %c0_i32 = arith.constant 0 : i32
    %c0_i32_0 = arith.constant 0 : i32
    %c0_i32_1 = arith.constant 0 : i32
    return %c0_i32, %c0_i32_0 : i32, i32
  }
  func.func @transform_5(%arg0: i32) -> (i32, i32) {
    %c0_i32 = arith.constant 0 : i32
    %c0_i32_0 = arith.constant 0 : i32
    %c0_i32_1 = arith.constant 0 : i32
    return %c0_i32, %c0_i32_0 : i32, i32
  }
  func.func @transform_6(%arg0: i32) -> (i32, i32) {
    %c0_i32 = arith.constant 0 : i32
    %c0_i32_0 = arith.constant 0 : i32
    %c0_i32_1 = arith.constant 0 : i32
    return %c0_i32, %c0_i32_0 : i32, i32
  }
  func.func @transform_7(%arg0: i32) -> (i32, i32) {
    %c0_i32 = arith.constant 0 : i32
    %c0_i32_0 = arith.constant 0 : i32
    %c0_i32_1 = arith.constant 0 : i32
    return %c0_i32, %c0_i32_0 : i32, i32
  }
}

</mosaic_0001>

<bundles_post_ra>
// kernel: lightgcn_macr_forward.1
= control target key start
LH: loop header
LB: loop body
LE: loop exit
PB: predicated region body
PF: predicated region fallthrough
CT: control target
= control target key end

     0   :  { %vm42_vm0 = vcmask 261120   ;;  %s1348_s0 = inlined_call_operand.vmem [shape: f32[64,32], index: 0, kind: input, shape index: {}]   ;;  %s1349_s1 = inlined_call_operand.vmem [shape: f32[32,64], index: 1, kind: input, shape index: {}]   ;;  %s1350_s2 = inlined_call_operand.vmem [shape: f32[1,64], index: 2, kind: input, shape index: {}]   ;;  %s1351_s3 = inlined_call_operand.vmem [shape: f32[128,128], index: 3, kind: input, shape index: {}]   ;;  %s1352_s4 = inlined_call_operand.vmem [shape: s32[16,1], index: 4, kind: input, shape index: {}]   ;;  %s1353_s5 = inlined_call_operand.vmem [shape: f32[8,1], index: 5, kind: input, shape index: {}]   ;;  %s1354_s6 = inlined_call_operand.vmem [shape: f32[8,1], index: 6, kind: output, shape index: {0}]   ;;  %s1355_s7 = inlined_call_operand.hbm [shape: f32[1,1], index: 7, kind: output, shape index: {1}]  }
   0x1   :  { %v37_v0 = vld [vmem:[%s1349_s1 + $0x18] sm:$0xff]  ;;  %v36_v1 = vld [vmem:[%s1349_s1 + $0x10] sm:$0xff]  ;;  %v977_v2 = vld [vmem:[%s1348_s0 + $0x20] sm:$0xff] }
   0x2   :  { %790 = vmatpush.msra.mxu3 %v37_v0  ;;  %79 = vmatpush.msra.mxu0 %v37_v0  ;;  %v35_v3 = vld [vmem:[%s1349_s1 + $0x8] sm:$0xff]  ;;  %329 = vst.msk [vmem:[#allocation2 + $0x20] sm:$0xff] %vm42_vm0, %v977_v2  ;;  %v994_v5 = vld [vmem:[%s1348_s0 + $0x30] sm:$0xff]  ;;  %v34_v6 = vld [vmem:[%s1349_s1] sm:$0xff] }
   0x3   :  { %v987_v4 = vld [vmem:[%s1348_s0 + $0x28] sm:$0xff]  ;;  %331 = vst.msk [vmem:[#allocation2 + $0x30] sm:$0xff] %vm42_vm0, %v994_v5  ;;  %v1004_v7 = vld [vmem:[%s1348_s0 + $0x38] sm:$0xff]  ;;  %v1011_v8 = vld [vmem:[%s1348_s0] sm:$0xff] }
   0x4   :  { %791 = vmatpush.msra.mxu3 %v36_v1  ;;  %330 = vst.msk [vmem:[#allocation2 + $0x28] sm:$0xff] %vm42_vm0, %v987_v4  ;;  %80 = vmatpush.msra.mxu0 %v36_v1 }
   0x5   :  { %332 = vst.msk [vmem:[#allocation2 + $0x38] sm:$0xff] %vm42_vm0, %v1004_v7 }
   0x6   :  { %792 = vmatpush.msra.mxu3 %v35_v3  ;;  %81 = vmatpush.msra.mxu0 %v35_v3 }
   0x7   :  { %13 = vsyncpa [#allocation4], 0  ;;  %325 = vst.msk [vmem:[#allocation2] sm:$0xff] %vm42_vm0, %v1011_v8  ;;  %v1018_v9 = vld [vmem:[%s1348_s0 + $0x8] sm:$0xff]  ;;  %v1025_v10 = vld [vmem:[%s1348_s0 + $0x10] sm:$0xff]  ;;  %s927_s14 = smov [#allocation3]  }
   0x8   :  { %793 = vmatpush.msra.mxu3 %v34_v6  ;;  %82 = vmatpush.msra.mxu0 %v34_v6  ;;  %326 = vst.msk [vmem:[#allocation2 + $0x8] sm:$0xff] %vm42_vm0, %v1018_v9  ;;  %v1036_v11 = vld [vmem:[%s1348_s0 + $0x18] sm:$0xff]  ;;  %v1055_v12 = vld [vmem:[%s1350_s2] ss:$0 sm:$0xff]  ;;  %s923_s2 = smov 96   ;;  %s757_s15 = sshll.u32 %s927_s14, 4  ;;  %s758_s15 = int_to_ptr.vmem [resolvable:$true] %s757_s15 }
   0x9   :  { %774 = vmatmul.msk.f32.vlgmr.msra.gmra.mxu3 %vm42_vm0, %v977_v2  ;;  %770 = vmatmul.msk.f32.vlgmr.msra.gmra.mxu0 %vm42_vm0, %v1011_v8  ;;  %327 = vst.msk [vmem:[#allocation2 + $0x10] sm:$0xff] %vm42_vm0, %v1025_v10  ;;  %s759_s18 = sshll.u32 %s1355_s7, 4  ;;  %s760_s18 = int_to_ptr.hbm [resolvable:$true] %s759_s18 }
   0xa   :  { %328 = vst.msk [vmem:[#allocation2 + $0x18] sm:$0xff] %vm42_vm0, %v1036_v11 }
  0x11   :  { %775 = vmatmul.msk.f32.gmra.mxu3 %vm42_vm0, %v987_v4  ;;  %771 = vmatmul.msk.f32.gmra.mxu0 %vm42_vm0, %v1018_v9 }
  0x19   :  { %776 = vmatmul.msk.f32.gmra.mxu3 %vm42_vm0, %v994_v5  ;;  %772 = vmatmul.msk.f32.gmra.mxu0 %vm42_vm0, %v1025_v10 }
  0x21   :  { %777 = vmatmul.msk.f32.gmra.mxu3 %vm42_vm0, %v1004_v7  ;;  %773 = vmatmul.msk.f32.gmra.mxu0 %vm42_vm0, %v1036_v11 }
  0x86   :  { %v84_v13 = vpop.f32.mrf.mxu0 }
  0x87   :  { %v85_v14 = vadd.f32 %v1055_v12, %v84_v13 }
  0x89   :  { %v778_v15 = vmul.f32 -1.442695, %v85_v14 }
  0x8b   :  { %839 = vpow2.f32 %v778_v15 }
  0x8c   :  { %v96_v16 = vpop.f32.mrf.mxu3 }
  0x8d   :  { %v97_v31 = vadd.f32 %v1055_v12, %v96_v16 }
  0x8e   :  { %v87_v17 = vpop.f32.mrf.mxu0 }
  0x8f   :  { %v88_v18 = vadd.f32 %v1055_v12, %v87_v17 }
  0x91   :  { %v840_v19 = vpop.eup %839  ;;  %v779_v20 = vmul.f32 -1.442695, %v88_v18 }
  0x92   :  { %v189_v21 = vadd.f32 1.0, %v840_v19 }
  0x93   :  { %841 = vpow2.f32 %v779_v20 }
  0x94   :  { %v99_v22 = vpop.f32.mrf.mxu3  ;;  %843 = vrcp.f32 %v189_v21  ;;  %v208_v33 = vand.u32 2147483648, %v189_v21  ;;  %vm202_vm1 = vweird.f32 %v189_v21  ;;  %v206_v35 = vand.u32 2147483647, %v189_v21 }
  0x95   :  { %v100_v23 = vadd.f32 %v1055_v12, %v99_v22 }
  0x96   :  { %v90_v24 = vpop.f32.mrf.mxu0  ;;  %v209_v39 = vor.u32 1.1754944e-38, %v208_v33  ;;  %vm207_vm4 = vcmp.eq.f32.partialorder %v206_v35, 8.507059e+37 }
  0x97   :  { %143 = vrot.lane.b32.xlu1 %v100_v23, %s923_s2  ;;  %v91_v25 = vadd.f32 %v1055_v12, %v90_v24 }
  0x99   :  { %v842_v26 = vpop.eup %841  ;;  %v780_v27 = vmul.f32 -1.442695, %v91_v25 }
  0x9a   :  { %v844_v28 = vpop.eup %843  ;;  %v190_v29 = vadd.f32 1.0, %v842_v26 }
  0x9b   :  { %v198_v30 = vmul.f32 %v844_v28, %v189_v21  ;;  %845 = vpow2.f32 %v780_v27  ;;  %vm203_vm2 = vweird.f32 %v844_v28 }
  0x9c   :  { %v102_v32 = vpop.f32.mrf.mxu3  ;;  %847 = vrcp.f32 %v190_v29  ;;  %vm204_vm3 = vmor %vm202_vm1, %vm203_vm2  ;;  %vm217_vm5 = vweird.f32 %v190_v29  ;;  %v221_v48 = vand.u32 2147483647, %v190_v29  ;;  %v223_v49 = vand.u32 2147483648, %v190_v29 }
  0x9d   :  { %v199_v34 = vsub.f32 1.0, %v198_v30  ;;  %v103_v59 = vadd.f32 %v1055_v12, %v102_v32 }
  0x9e   :  { %v93_v36 = vpop.f32.mrf.mxu0  ;;  %v224_v54 = vor.u32 1.1754944e-38, %v223_v49  ;;  %vm222_vm8 = vcmp.eq.f32.partialorder %v221_v48, 8.507059e+37 }
  0x9f   :  { %141 = vrot.lane.b32.xlu1 %v97_v31, %s923_s2  ;;  %v200_v37 = vmul.f32 %v844_v28, %v199_v34  ;;  %v94_v38 = vadd.f32 %v1055_v12, %v93_v36 }
  0xa1   :  { %v846_v40 = vpop.eup %845  ;;  %v201_v41 = vadd.f32 %v844_v28, %v200_v37  ;;  %139 = vrot.lane.b32.xlu2 %v94_v38, %s923_s2 }
  0xa2   :  { %v848_v42 = vpop.eup %847  ;;  %v191_v43 = vadd.f32 1.0, %v846_v40 }
  0xa3   :  { %v205_v44 = vsel %vm204_vm3, %v844_v28, %v201_v41  ;;  %v213_v45 = vmul.f32 %v848_v42, %v190_v29  ;;  %vm218_vm6 = vweird.f32 %v848_v42 }
  0xa4   :  { %v105_v46 = vpop.f32.mrf.mxu3  ;;  %v210_v47 = vsel %vm207_vm4, %v209_v39, %v205_v44  ;;  %849 = vrcp.f32 %v191_v43  ;;  %vm219_vm7 = vmor %vm217_vm5, %vm218_vm6  ;;  %vm232_vm9 = vweird.f32 %v191_v43  ;;  %v238_v61 = vand.u32 2147483648, %v191_v43 }
  0xa5   :  { %v106_v50 = vadd.f32 %v1055_v12, %v105_v46  ;;  %v317_v51 = vmul.f32 %v210_v47, %v1011_v8  ;;  %v214_v52 = vsub.f32 1.0, %v213_v45  ;;  %v236_v0 = vand.u32 2147483647, %v191_v43 }
  0xa6   :  { %v239_v3 = vor.u32 1.1754944e-38, %v238_v61 }
  0xa7   :  { %333 = vst.msk [vmem:[#allocation2 + $0x40] sm:$0xff] %vm42_vm0, %v317_v51  ;;  %147 = vrot.lane.b32.xlu0 %v106_v50, %s923_s2  ;;  %v215_v53 = vmul.f32 %v848_v42, %v214_v52  ;;  %vm237_vm12 = vcmp.eq.f32.partialorder %v236_v0, 8.507059e+37 }
  0xa9   :  { %v216_v55 = vadd.f32 %v848_v42, %v215_v53 }
  0xaa   :  { %v850_v56 = vpop.eup %849 }
  0xab   :  { %v220_v57 = vsel %vm219_vm7, %v848_v42, %v216_v55  ;;  %v228_v58 = vmul.f32 %v850_v56, %v191_v43  ;;  %vm233_vm10 = vweird.f32 %v850_v56 }
  0xac   :  { %v225_v60 = vsel %vm222_vm8, %v224_v54, %v220_v57  ;;  %vm234_vm11 = vmor %vm232_vm9, %vm233_vm10 }
  0xad   :  { %v318_v62 = vmul.f32 %v225_v60, %v1018_v9  ;;  %v229_v63 = vsub.f32 1.0, %v228_v58 }
  0xaf   :  { %334 = vst.msk [vmem:[#allocation2 + $0x48] sm:$0xff] %vm42_vm0, %v318_v62  ;;  %145 = vrot.lane.b32.xlu0 %v103_v59, %s923_s2  ;;  %v230_v1 = vmul.f32 %v850_v56, %v229_v63 }
  0xb1   :  { %v231_v6 = vadd.f32 %v850_v56, %v230_v1 }
  0xb3   :  { %v235_v8 = vsel %vm234_vm11, %v850_v56, %v231_v6 }
  0xb4   :  { %v240_v13 = vsel %vm237_vm12, %v239_v3, %v235_v8 }
  0xb5   :  { %v319_v12 = vmul.f32 %v240_v13, %v1025_v10 }
  0xb7   :  { %335 = vst.msk [vmem:[#allocation2 + $0x50] sm:$0xff] %vm42_vm0, %v319_v12 }
  0xfb   :  { %v140_v14 = vpop.permute.xlu2 %139 }
  0xfc   :  { %v781_v9 = vmul.f32 -1.442695, %v140_v14 }
  0xfe   :  { %851 = vpow2.f32 %v781_v9 }
 0x104   :  { %v852_v15 = vpop.eup %851 }
 0x105   :  { %v192_v16 = vadd.f32 1.0, %v852_v15 }
 0x107   :  { %853 = vrcp.f32 %v192_v16  ;;  %v253_v10 = vand.u32 2147483648, %v192_v16  ;;  %vm247_vm13 = vweird.f32 %v192_v16  ;;  %v251_v29 = vand.u32 2147483647, %v192_v16 }
 0x109   :  { %v144_v17 = vpop.permute.xlu1 %143  ;;  %v254_v30 = vor.u32 1.1754944e-38, %v253_v10  ;;  %vm252_vm1 = vcmp.eq.f32.partialorder %v251_v29, 8.507059e+37  ;;  %v1110_v29 = vld [vmem:[#allocation2 + $0x48] sm:$0xff] }
 0x10a   :  { %v783_v18 = vmul.f32 -1.442695, %v144_v17 }
 0x10c   :  { %855 = vpow2.f32 %v783_v18 }
 0x10d   :  { %v854_v19 = vpop.eup %853 }
 0x10e   :  { %v243_v20 = vmul.f32 %v854_v19, %v192_v16  ;;  %vm248_vm14 = vweird.f32 %v854_v19 }
 0x10f   :  { %vm249_vm15 = vmor %vm247_vm13, %vm248_vm14 }
 0x110   :  { %v244_v21 = vsub.f32 1.0, %v243_v20 }
 0x111   :  { %v142_v22 = vpop.permute.xlu1 %141 }
 0x112   :  { %v856_v23 = vpop.eup %855  ;;  %v782_v24 = vmul.f32 -1.442695, %v142_v22  ;;  %v245_v25 = vmul.f32 %v854_v19, %v244_v21 }
 0x113   :  { %v194_v26 = vadd.f32 1.0, %v856_v23 }
 0x114   :  { %857 = vpow2.f32 %v782_v24  ;;  %v246_v27 = vadd.f32 %v854_v19, %v245_v25 }
 0x115   :  { %859 = vrcp.f32 %v194_v26  ;;  %v283_v40 = vand.u32 2147483648, %v194_v26  ;;  %v281_v42 = vand.u32 2147483647, %v194_v26  ;;  %vm277_vm3 = vweird.f32 %v194_v26 }
 0x116   :  { %v250_v28 = vsel %vm249_vm15, %v854_v19, %v246_v27 }
 0x117   :  { %v255_v32 = vsel %vm252_vm1, %v254_v30, %v250_v28  ;;  %vm282_vm5 = vcmp.eq.f32.partialorder %v281_v42, 8.507059e+37  ;;  %v1106_v28 = vld [vmem:[#allocation2 + $0x50] sm:$0xff]  ;;  %v1114_v30 = vld [vmem:[#allocation2 + $0x40] sm:$0xff]  ;;  %v1170_v42 = vld [vmem:[%s1351_s3 + $0x58] sm:$0xff] }
 0x118   :  { %v320_v35 = vmul.f32 %v255_v32, %v1036_v11  ;;  %v284_v11 = vor.u32 1.1754944e-38, %v283_v40  ;;  %v1120_v32 = vld [vmem:[#allocation2 + $0x30] sm:$0xff] }
 0x119   :  { %v148_v31 = vpop.permute.xlu0 %147  ;;  %v1156_v40 = vld [vmem:[%s1351_s3 + $0x50] sm:$0xff] }
 0x11a   :  { %v858_v33 = vpop.eup %857  ;;  %v785_v34 = vmul.f32 -1.442695, %v148_v31  ;;  %336 = vst.msk [vmem:[#allocation2 + $0x58] sm:$0xff] %vm42_vm0, %v320_v35  ;;  %v1116_v31 = vld [vmem:[#allocation2 + $0x38] sm:$0xff] }
 0x11b   :  { %v860_v36 = vpop.eup %859  ;;  %v193_v37 = vadd.f32 1.0, %v858_v33  ;;  %v1124_v33 = vld [vmem:[#allocation2 + $0x28] sm:$0xff]  ;;  %v1132_v35 = vld [vmem:[#allocation2 + $0x18] sm:$0xff] }
 0x11c   :  { %v273_v38 = vmul.f32 %v860_v36, %v194_v26  ;;  %861 = vpow2.f32 %v785_v34  ;;  %vm278_vm2 = vweird.f32 %v860_v36  ;;  %v1128_v34 = vld [vmem:[#allocation2 + $0x20] sm:$0xff] }
 0x11d   :  { %863 = vrcp.f32 %v193_v37  ;;  %vm279_vm4 = vmor %vm277_vm3, %vm278_vm2  ;;  %v268_v54 = vand.u32 2147483648, %v193_v37  ;;  %v266_v56 = vand.u32 2147483647, %v193_v37  ;;  %vm262_vm7 = vweird.f32 %v193_v37 }
 0x11e   :  { %v274_v39 = vsub.f32 1.0, %v273_v38  ;;  %v1144_v38 = vld [vmem:[#allocation2] sm:$0xff] }
 0x11f   :  { %v269_v60 = vor.u32 1.1754944e-38, %v268_v54  ;;  %vm267_vm9 = vcmp.eq.f32.partialorder %v266_v56, 8.507059e+37 }
 0x120   :  { %v275_v41 = vmul.f32 %v860_v36, %v274_v39  ;;  %v1151_v39 = vld [vmem:[%s1351_s3] sm:$0xff] }
 0x121   :  { %v146_v43 = vpop.permute.xlu0 %145  ;;  %v1102_v27 = vld [vmem:[#allocation2 + $0x58] sm:$0xff] }
 0x122   :  { %v862_v44 = vpop.eup %861  ;;  %v276_v45 = vadd.f32 %v860_v36, %v275_v41  ;;  %v784_v46 = vmul.f32 -1.442695, %v146_v43  ;;  %v1165_v41 = vld [vmem:[%s1351_s3 + $0x8] sm:$0xff]  ;;  %v1177_v43 = vld [vmem:[%s1351_s3 + $0x10] sm:$0xff] }
 0x123   :  { %v864_v47 = vpop.eup %863  ;;  %v196_v48 = vadd.f32 1.0, %v862_v44  ;;  %v1182_v44 = vld [vmem:[%s1351_s3 + $0x60] sm:$0xff] }
 0x124   :  { %v280_v49 = vsel %vm279_vm4, %v860_v36, %v276_v45  ;;  %v258_v50 = vmul.f32 %v864_v47, %v193_v37  ;;  %865 = vpow2.f32 %v784_v46  ;;  %vm263_vm6 = vweird.f32 %v864_v47  ;;  %v1136_v36 = vld [vmem:[#allocation2 + $0x10] sm:$0xff]  ;;  %v1140_v37 = vld [vmem:[#allocation2 + $0x8] sm:$0xff]  ;;  %v1189_v45 = vld [vmem:[%s1351_s3 + $0x18] sm:$0xff] }
 0x125   :  { %v285_v51 = vsel %vm282_vm5, %v284_v11, %v280_v49  ;;  %867 = vrcp.f32 %v196_v48  ;;  %vm264_vm8 = vmor %vm262_vm7, %vm263_vm6  ;;  %v313_v3 = vand.u32 2147483648, %v196_v48  ;;  %v311_v8 = vand.u32 2147483647, %v196_v48  ;;  %v1194_v46 = vld [vmem:[%s1351_s3 + $0x68] sm:$0xff]  ;;  %v1206_v11 = vld [vmem:[%s1351_s3 + $0x70] sm:$0xff] }
 0x126   :  { %v322_v52 = vmul.f32 %v285_v51, %v987_v4  ;;  %v259_v53 = vsub.f32 1.0, %v258_v50  ;;  %vm307_vm11 = vweird.f32 %v196_v48  ;;  %v1218_v49 = vld [vmem:[%s1351_s3 + $0x78] sm:$0xff]  ;;  %v363_v50 = vld [vmem:[%s1351_s3 + $0x30] sm:$0xff] }
 0x127   :  { %v314_v14 = vor.u32 1.1754944e-38, %v313_v3  ;;  %vm312_vm13 = vcmp.eq.f32.partialorder %v311_v8, 8.507059e+37  ;;  %v364_v51 = vld [vmem:[%s1351_s3 + $0x38] sm:$0xff] }
 0x128   :  { %338 = vst.msk [vmem:[#allocation2 + $0x68] sm:$0xff] %vm42_vm0, %v322_v52  ;;  %v260_v55 = vmul.f32 %v864_v47, %v259_v53  ;;  %v365_v52 = vld [vmem:[%s1351_s3 + $0x40] sm:$0xff]  ;;  %v366_v53 = vld [vmem:[%s1351_s3 + $0x48] sm:$0xff] }
 0x12a   :  { %v866_v57 = vpop.eup %865  ;;  %v261_v58 = vadd.f32 %v864_v47, %v260_v55 }
 0x12b   :  { %v868_v59 = vpop.eup %867  ;;  %v195_v61 = vadd.f32 1.0, %v866_v57 }
 0x12c   :  { %v265_v62 = vsel %vm264_vm8, %v864_v47, %v261_v58  ;;  %v303_v63 = vmul.f32 %v868_v59, %v196_v48  ;;  %vm308_vm10 = vweird.f32 %v868_v59  ;;  %v1201_v47 = vld [vmem:[%s1351_s3 + $0x20] sm:$0xff]  ;;  %v1213_v48 = vld [vmem:[%s1351_s3 + $0x28] sm:$0xff] }
 0x12d   :  { %v270_v0 = vsel %vm267_vm9, %v269_v60, %v265_v62  ;;  %869 = vrcp.f32 %v195_v61  ;;  %vm309_vm12 = vmor %vm307_vm11, %vm308_vm10  ;;  %v296_v20 = vand.u32 2147483647, %v195_v61  ;;  %vm292_vm15 = vweird.f32 %v195_v61 }
 0x12e   :  { %v321_v4 = vmul.f32 %v270_v0, %v977_v2  ;;  %v304_v1 = vsub.f32 1.0, %v303_v63  ;;  %v298_v2 = vand.u32 2147483648, %v195_v61 }
 0x12f   :  { %vm297_vm2 = vcmp.eq.f32.partialorder %v296_v20, 8.507059e+37  ;;  %v1094_v10 = vld [vmem:[#allocation2 + $0x68] sm:$0xff] }
 0x130   :  { %337 = vst.msk [vmem:[#allocation2 + $0x60] sm:$0xff] %vm42_vm0, %v321_v4  ;;  %v305_v6 = vmul.f32 %v868_v59, %v304_v1  ;;  %v299_v22 = vor.u32 1.1754944e-38, %v298_v2 }
 0x132   :  { %v306_v13 = vadd.f32 %v868_v59, %v305_v6 }
 0x133   :  { %v870_v12 = vpop.eup %869 }
 0x134   :  { %v310_v9 = vsel %vm309_vm12, %v868_v59, %v306_v13  ;;  %v288_v15 = vmul.f32 %v870_v12, %v195_v61  ;;  %vm293_vm14 = vweird.f32 %v870_v12  ;;  %v541_v13 = vld [vmem:[%s1352_s4] sm:$0xff] }
 0x135   :  { %v315_v16 = vsel %vm312_vm13, %v314_v14, %v310_v9  ;;  %vm294_vm1 = vmor %vm292_vm15, %vm293_vm14  ;;  %v555_v14 = vadd.s32 64, %v541_v13  ;;  %v542_v9 = vld [vmem:[%s1352_s4 + $0x8] sm:$0xff] }
 0x136   :  { %v324_v17 = vmul.f32 %v315_v16, %v1004_v7  ;;  %v289_v18 = vsub.f32 1.0, %v288_v15  ;;  %v556_v15 = vadd.s32 64, %v542_v9 }
 0x138   :  { %340 = vst.msk [vmem:[#allocation2 + $0x78] sm:$0xff] %vm42_vm0, %v324_v17  ;;  %v290_v19 = vmul.f32 %v870_v12, %v289_v18 }
 0x13a   :  { %v291_v21 = vadd.f32 %v870_v12, %v290_v19 }
 0x13c   :  { %v295_v23 = vsel %vm294_vm1, %v870_v12, %v291_v21  ;;  %v924_v12 = vmov 0  }
 0x13d   :  { %v300_v24 = vsel %vm297_vm2, %v299_v22, %v295_v23  ;;  %836 = vset.pattern.permute.xlu0 %v924_v12  ;;  %837 = vset.pattern.permute.xlu1 %v924_v12  ;;  %vm701_vm2 = vcmask 7168  }
 0x13e   :  { %v323_v25 = vmul.f32 %v300_v24, %v994_v5  ;;  %v1098_v5 = vld [vmem:[#allocation2 + $0x60] sm:$0xff]  ;;  %835 = vset.pattern.permute.xlu2 %v924_v12  ;;  %558 = vperm.xlu0 %836, %v555_v14  }
 0x13f   :  { %v1085_v26 = vld [vmem:[#allocation2 + $0x78] sm:$0xff]  ;;  %544 = vperm.xlu2 %835, %v541_v13   ;;  %547 = vperm.xlu1 %837, %v542_v9  }
 0x140   :  { %339 = vst.msk [vmem:[#allocation2 + $0x70] sm:$0xff] %vm42_vm0, %v323_v25  ;;  %373 = vmatpush.msra.mxu1 %v1085_v26  ;;  %794 = vmatpush.msrb.mxu3 %v1085_v26 }
 0x147   :  { %v1090_v7 = vld [vmem:[#allocation2 + $0x70] sm:$0xff]  ;;  %561 = vperm.xlu2 %835, %v556_v15  }
 0x148   :  { %374 = vmatpush.msra.mxu1 %v1090_v7  ;;  %795 = vmatpush.msrb.mxu3 %v1090_v7 }
 0x14a   :  { %375 = vmatpush.msra.mxu1 %v1094_v10  ;;  %796 = vmatpush.msrb.mxu3 %v1094_v10 }
 0x14c   :  { %376 = vmatpush.msra.mxu1 %v1098_v5  ;;  %797 = vmatpush.msrb.mxu3 %v1098_v5 }
 0x14e   :  { %377 = vmatpush.msra.mxu1 %v1102_v27  ;;  %798 = vmatpush.msrb.mxu3 %v1102_v27 }
 0x150   :  { %378 = vmatpush.msra.mxu1 %v1106_v28  ;;  %799 = vmatpush.msrb.mxu3 %v1106_v28 }
 0x152   :  { %379 = vmatpush.msra.mxu1 %v1110_v29  ;;  %800 = vmatpush.msrb.mxu3 %v1110_v29 }
 0x154   :  { %380 = vmatpush.msra.mxu1 %v1114_v30  ;;  %801 = vmatpush.msrb.mxu3 %v1114_v30 }
 0x156   :  { %381 = vmatpush.msra.mxu1 %v1116_v31  ;;  %802 = vmatpush.msrb.mxu3 %v1116_v31 }
 0x158   :  { %382 = vmatpush.msra.mxu1 %v1120_v32  ;;  %803 = vmatpush.msrb.mxu3 %v1120_v32 }
 0x15a   :  { %383 = vmatpush.msra.mxu1 %v1124_v33  ;;  %804 = vmatpush.msrb.mxu3 %v1124_v33 }
 0x15c   :  { %384 = vmatpush.msra.mxu1 %v1128_v34  ;;  %805 = vmatpush.msrb.mxu3 %v1128_v34 }
 0x15e   :  { %385 = vmatpush.msra.mxu1 %v1132_v35  ;;  %806 = vmatpush.msrb.mxu3 %v1132_v35 }
 0x160   :  { %386 = vmatpush.msra.mxu1 %v1136_v36  ;;  %807 = vmatpush.msrb.mxu3 %v1136_v36 }
 0x162   :  { %387 = vmatpush.msra.mxu1 %v1140_v37  ;;  %808 = vmatpush.msrb.mxu3 %v1140_v37 }
 0x164   :  { %388 = vmatpush.msra.mxu1 %v1144_v38  ;;  %809 = vmatpush.msrb.mxu3 %v1144_v38 }
 0x165   :  { %389 = vmatmul.f32.vlgmr.msra.gmra.mxu1 %v1151_v39  ;;  %419 = vmatmul.f32.vlgmr.msrb.gmra.mxu3 %v1156_v40 }
 0x16d   :  { %392 = vmatmul.f32.gmra.mxu1 %v1165_v41  ;;  %422 = vmatmul.f32.gmra.mxu3 %v1170_v42 }
 0x175   :  { %395 = vmatmul.f32.gmra.mxu1 %v1177_v43  ;;  %425 = vmatmul.f32.gmra.mxu3 %v1182_v44 }
 0x17d   :  { %398 = vmatmul.f32.gmra.mxu1 %v1189_v45  ;;  %428 = vmatmul.f32.gmra.mxu3 %v1194_v46 }
 0x185   :  { %401 = vmatmul.f32.gmra.mxu1 %v1201_v47  ;;  %431 = vmatmul.f32.gmra.mxu3 %v1206_v11 }
 0x18d   :  { %404 = vmatmul.f32.gmra.mxu1 %v1213_v48  ;;  %434 = vmatmul.f32.gmra.mxu3 %v1218_v49 }
 0x195   :  { %407 = vmatmul.f32.gmra.mxu1 %v363_v50 }
 0x19d   :  { %410 = vmatmul.f32.gmra.mxu1 %v364_v51 }
 0x1a5   :  { %413 = vmatmul.f32.gmra.mxu1 %v365_v52 }
 0x1ad   :  { %416 = vmatmul.f32.gmra.mxu1 %v366_v53 }
 0x1b1   :  { %v548_v9 = vpop.permute.xlu1 %547 }
 0x1e2   :  { %v1234_v54 = vpop.f32.mrf.mxu1 }
 0x1e8   :  { %v1236_v55 = vpop.f32.mrf.mxu3 }
 0x1ea   :  { %v1238_v56 = vpop.f32.mrf.mxu1 }
 0x1f0   :  { %v1240_v57 = vpop.f32.mrf.mxu3 }
 0x1f2   :  { %v1242_v58 = vpop.f32.mrf.mxu1 }
 0x1f8   :  { %v1244_v59 = vpop.f32.mrf.mxu3 }
 0x1fa   :  { %v1246_v60 = vpop.f32.mrf.mxu1 }
 0x200   :  { %v1248_v61 = vpop.f32.mrf.mxu3 }
 0x202   :  { %v1250_v62 = vpop.f32.mrf.mxu1 }
 0x208   :  { %v1252_v63 = vpop.f32.mrf.mxu3 }
 0x20a   :  { %v1254_v0 = vpop.f32.mrf.mxu1 }
 0x210   :  { %v1256_v4 = vpop.f32.mrf.mxu3 }
 0x211   :  { %454 = vmatpush.msrb.mxu0 %v1256_v4  ;;  %810 = vmatpush.msra.mxu2 %v1256_v4 }
 0x212   :  { %v408_v1 = vpop.f32.mrf.mxu1 }
 0x213   :  { %455 = vmatpush.msrb.mxu0 %v1252_v63  ;;  %811 = vmatpush.msra.mxu2 %v1252_v63  ;;  %v444_v16 = vadd.f32 %v408_v1, %v1120_v32 }
 0x215   :  { %456 = vmatpush.msrb.mxu0 %v1248_v61  ;;  %812 = vmatpush.msra.mxu2 %v1248_v61 }
 0x217   :  { %457 = vmatpush.msrb.mxu0 %v1244_v59  ;;  %813 = vmatpush.msra.mxu2 %v1244_v59 }
 0x219   :  { %458 = vmatpush.msrb.mxu0 %v1240_v57  ;;  %814 = vmatpush.msra.mxu2 %v1240_v57 }
 0x21a   :  { %v411_v3 = vpop.f32.mrf.mxu1 }
 0x21b   :  { %459 = vmatpush.msrb.mxu0 %v1236_v55  ;;  %815 = vmatpush.msra.mxu2 %v1236_v55  ;;  %v445_v2 = vadd.f32 %v411_v3, %v1116_v31 }
 0x222   :  { %v414_v6 = vpop.f32.mrf.mxu1 }
 0x223   :  { %v446_v21 = vadd.f32 %v414_v6, %v1114_v30 }
 0x22a   :  { %v1270_v8 = vpop.f32.mrf.mxu1 }
 0x22b   :  { %460 = vmatpush.msrb.mxu0 %v1270_v8  ;;  %816 = vmatpush.msra.mxu2 %v1270_v8 }
 0x22d   :  { %461 = vmatpush.msrb.mxu0 %v414_v6  ;;  %817 = vmatpush.msra.mxu2 %v414_v6  ;;  %v440_v6 = vadd.f32 %v1242_v58, %v1136_v36 }
 0x22f   :  { %462 = vmatpush.msrb.mxu0 %v411_v3  ;;  %818 = vmatpush.msra.mxu2 %v411_v3 }
 0x231   :  { %463 = vmatpush.msrb.mxu0 %v408_v1  ;;  %819 = vmatpush.msra.mxu2 %v408_v1  ;;  %v441_v1 = vadd.f32 %v1246_v60, %v1132_v35  ;;  %v438_v35 = vadd.f32 %v1234_v54, %v1144_v38 }
 0x233   :  { %464 = vmatpush.msrb.mxu0 %v1254_v0  ;;  %820 = vmatpush.msra.mxu2 %v1254_v0 }
 0x235   :  { %465 = vmatpush.msrb.mxu0 %v1250_v62  ;;  %821 = vmatpush.msra.mxu2 %v1250_v62 }
 0x237   :  { %466 = vmatpush.msrb.mxu0 %v1246_v60  ;;  %822 = vmatpush.msra.mxu2 %v1246_v60 }
 0x239   :  { %467 = vmatpush.msrb.mxu0 %v1242_v58  ;;  %823 = vmatpush.msra.mxu2 %v1242_v58 }
 0x23b   :  { %468 = vmatpush.msrb.mxu0 %v1238_v56  ;;  %824 = vmatpush.msra.mxu2 %v1238_v56 }
 0x23d   :  { %469 = vmatpush.msrb.mxu0 %v1234_v54  ;;  %825 = vmatpush.msra.mxu2 %v1234_v54 }
 0x23e   :  { %470 = vmatmul.f32.vlgmr.msrb.gmra.mxu0 %v1151_v39  ;;  %488 = vmatmul.f32.vlgmr.msra.gmra.mxu2 %v363_v50 }
 0x246   :  { %473 = vmatmul.f32.gmra.mxu0 %v1165_v41  ;;  %491 = vmatmul.f32.gmra.mxu2 %v364_v51  ;;  %v449_v51 = vadd.f32 %v1240_v57, %v1102_v27  ;;  %v443_v27 = vadd.f32 %v1254_v0, %v1124_v33  ;;  %v439_v0 = vadd.f32 %v1238_v56, %v1140_v37 }
 0x24e   :  { %476 = vmatmul.f32.gmra.mxu0 %v1177_v43  ;;  %494 = vmatmul.f32.gmra.mxu2 %v365_v52 }
 0x256   :  { %479 = vmatmul.f32.gmra.mxu0 %v1189_v45  ;;  %497 = vmatmul.f32.gmra.mxu2 %v366_v53 }
 0x25e   :  { %482 = vmatmul.f32.gmra.mxu0 %v1201_v47  ;;  %500 = vmatmul.f32.gmra.mxu2 %v1156_v40  ;;  %v452_v47 = vadd.f32 %v1252_v63, %v1090_v7  ;;  %v448_v7 = vadd.f32 %v1236_v55, %v1106_v28  ;;  %v442_v28 = vadd.f32 %v1250_v62, %v1128_v34  ;;  %v925_v62 = vmov 0.0  }
 0x266   :  { %485 = vmatmul.f32.gmra.mxu0 %v1213_v48  ;;  %503 = vmatmul.f32.gmra.mxu2 %v1170_v42 }
 0x26e   :  { %506 = vmatmul.f32.gmra.mxu2 %v1182_v44 }
 0x276   :  { %509 = vmatmul.f32.gmra.mxu2 %v1194_v46  ;;  %v453_v46 = vadd.f32 %v1256_v4, %v1085_v26  ;;  %v559_v4 = vpop.permute.xlu0 %558 }
 0x27e   :  { %512 = vmatmul.f32.gmra.mxu2 %v1206_v11  ;;  %v451_v11 = vadd.f32 %v1248_v61, %v1094_v10  ;;  %v447_v10 = vadd.f32 %v1270_v8, %v1110_v29  ;;  %v545_v29 = vpop.permute.xlu2 %544 }
 0x286   :  { %515 = vmatmul.f32.gmra.mxu2 %v1218_v49  ;;  %v450_v49 = vadd.f32 %v1244_v59, %v1098_v5  ;;  %v535_v5 = vlaneseq  ;;  %v562_v36 = vpop.permute.xlu2 %561 }
 0x288   :  { %v536_v57 = vand.u32 127, %v535_v5 }
 0x28a   :  { %vm563_vm3 = vcmp.eq.s32.totalorder %v536_v57, %v559_v4  ;;  %vm549_vm4 = vcmp.eq.s32.totalorder %v536_v57, %v545_v29  ;;  %vm550_vm5 = vcmp.eq.s32.totalorder %v536_v57, %v548_v9  ;;  %vm564_vm6 = vcmp.eq.s32.totalorder %v536_v57, %v562_v36 }
 0x28b   :  { %v569_v8 = vsel %vm563_vm3, 0.10000001, %v925_v62  ;;  %v553_v13 = vsel %vm549_vm4, 0.23333333, %v925_v62  ;;  %v554_v37 = vsel %vm550_vm5, 0.26666668, %v925_v62 }
 0x28c   :  { %v571_v12 = vadd.f32 %v569_v8, %v553_v13  ;;  %v570_v56 = vsel %vm564_vm6, 0.06666666, %v925_v62  ;;  %v596_v8 = vld [vmem:[%s1353_s5] sm:$0xff] }
 0x28d   :  { %v572_v58 = vadd.f32 %v570_v56, %v554_v37  ;;  %v696_v37 = vsub.f32 1.0, %v596_v8 }
 0x2bb   :  { %v471_v39 = vpop.f32.mrf.mxu0 }
 0x2bc   :  { %v519_v14 = vadd.f32 %v471_v39, %v438_v35 }
 0x2c1   :  { %v489_v17 = vpop.f32.mrf.mxu2 }
 0x2c2   :  { %v525_v18 = vadd.f32 %v489_v17, %v444_v16 }
 0x2c3   :  { %v474_v42 = vpop.f32.mrf.mxu0 }
 0x2c4   :  { %v520_v60 = vadd.f32 %v474_v42, %v439_v0 }
 0x2c9   :  { %v492_v19 = vpop.f32.mrf.mxu2 }
 0x2ca   :  { %v526_v20 = vadd.f32 %v492_v19, %v445_v2 }
 0x2cb   :  { %v477_v44 = vpop.f32.mrf.mxu0 }
 0x2cc   :  { %v521_v34 = vadd.f32 %v477_v44, %v440_v6 }
 0x2d1   :  { %v495_v22 = vpop.f32.mrf.mxu2 }
 0x2d2   :  { %v527_v23 = vadd.f32 %v495_v22, %v446_v21 }
 0x2d3   :  { %v480_v32 = vpop.f32.mrf.mxu0 }
 0x2d4   :  { %v522_v33 = vadd.f32 %v480_v32, %v441_v1 }
 0x2d9   :  { %v498_v24 = vpop.f32.mrf.mxu2 }
 0x2da   :  { %v528_v63 = vadd.f32 %v498_v24, %v447_v10 }
 0x2db   :  { %v483_v26 = vpop.f32.mrf.mxu0 }
 0x2dc   :  { %v523_v3 = vadd.f32 %v483_v26, %v442_v28 }
 0x2e1   :  { %v501_v25 = vpop.f32.mrf.mxu2 }
 0x2e2   :  { %v529_v61 = vadd.f32 %v501_v25, %v448_v7 }
 0x2e3   :  { %v486_v59 = vpop.f32.mrf.mxu0 }
 0x2e4   :  { %v524_v55 = vadd.f32 %v486_v59, %v443_v27 }
 0x2e9   :  { %v504_v40 = vpop.f32.mrf.mxu2 }
 0x2ea   :  { %v530_v53 = vadd.f32 %v504_v40, %v449_v51 }
 0x2f1   :  { %v507_v41 = vpop.f32.mrf.mxu2 }
 0x2f2   :  { %v531_v52 = vadd.f32 %v507_v41, %v450_v49 }
 0x2f9   :  { %v510_v43 = vpop.f32.mrf.mxu2 }
 0x2fa   :  { %v532_v50 = vadd.f32 %v510_v43, %v451_v11 }
 0x301   :  { %v513_v45 = vpop.f32.mrf.mxu2 }
 0x302   :  { %v533_v48 = vadd.f32 %v513_v45, %v452_v47 }
 0x309   :  { %v516_v31 = vpop.f32.mrf.mxu2 }
 0x30a   :  { %v534_v30 = vadd.f32 %v516_v31, %v453_v46 }
 0x30c   :  { %573 = vmatpush.msra.mxu3 %v534_v30 }
 0x30e   :  { %574 = vmatpush.msra.mxu3 %v533_v48 }
 0x310   :  { %575 = vmatpush.msra.mxu3 %v532_v50 }
 0x312   :  { %576 = vmatpush.msra.mxu3 %v531_v52 }
 0x314   :  { %577 = vmatpush.msra.mxu3 %v530_v53 }
 0x316   :  { %578 = vmatpush.msra.mxu3 %v529_v61 }
 0x318   :  { %579 = vmatpush.msra.mxu3 %v528_v63 }
 0x31a   :  { %580 = vmatpush.msra.mxu3 %v527_v23 }
 0x31c   :  { %581 = vmatpush.msra.mxu3 %v526_v20 }
 0x31e   :  { %582 = vmatpush.msra.mxu3 %v525_v18 }
 0x320   :  { %583 = vmatpush.msra.mxu3 %v524_v55 }
 0x322   :  { %584 = vmatpush.msra.mxu3 %v523_v3 }
 0x324   :  { %585 = vmatpush.msra.mxu3 %v522_v33 }
 0x326   :  { %586 = vmatpush.msra.mxu3 %v521_v34 }
 0x328   :  { %587 = vmatpush.msra.mxu3 %v520_v60  ;;  %v685_v60 = vmul.f32 2.0, %v596_v8 }
 0x32a   :  { %588 = vmatpush.msra.mxu3 %v519_v14  ;;  %v686_v56 = vadd.f32 1.0, %v685_v60 }
 0x32b   :  { %589 = vmatmul.f32.vlgmr.msra.gmra.mxu3 %v571_v12 }
 0x333   :  { %592 = vmatmul.f32.gmra.mxu3 %v572_v58 }
 0x3ae   :  { %v590_v15 = vpop.f32.mrf.mxu3 }
 0x3af   :  { %v786_v16 = vmul.f32 -1.442695, %v590_v15 }
 0x3b1   :  { %871 = vpow2.f32 %v786_v16 }
 0x3b6   :  { %v593_v17 = vpop.f32.mrf.mxu3 }
 0x3b7   :  { %v872_v38 = vpop.eup %871  ;;  %v597_v54 = vmul.f32 %v593_v17, %v590_v15  ;;  %v787_v18 = vmul.f32 -1.442695, %v593_v17  ;;  %v687_v17 = vsub.f32 %v686_v56, %v596_v8 }
 0x3b8   :  { %v604_v2 = vadd.f32 1.0, %v872_v38 }
 0x3b9   :  { %873 = vpow2.f32 %v787_v18  ;;  %v598_v19 = vsel %vm42_vm0, %v597_v54, 0.0 }
 0x3ba   :  { %875 = vrcp.f32 %v604_v2  ;;  %599 = vadd.xlane.f32.xlu1 %v598_v19  ;;  %v616_v25 = vand.u32 2147483648, %v604_v2  ;;  %v614_v40 = vand.u32 2147483647, %v604_v2  ;;  %vm610_vm8 = vweird.f32 %v604_v2 }
 0x3bc   :  { %v617_v43 = vor.u32 1.1754944e-38, %v616_v25  ;;  %vm615_vm10 = vcmp.eq.f32.partialorder %v614_v40, 8.507059e+37 }
 0x3bf   :  { %v874_v20 = vpop.eup %873 }
 0x3c0   :  { %v876_v21 = vpop.eup %875  ;;  %v626_v22 = vadd.f32 1.0, %v874_v20 }
 0x3c1   :  { %v606_v23 = vmul.f32 %v876_v21, %v604_v2  ;;  %vm611_vm7 = vweird.f32 %v876_v21 }
 0x3c2   :  { %877 = vrcp.f32 %v626_v22  ;;  %vm612_vm9 = vmor %vm610_vm8, %vm611_vm7  ;;  %v638_v47 = vand.u32 2147483648, %v626_v22  ;;  %v636_v11 = vand.u32 2147483647, %v626_v22  ;;  %vm632_vm12 = vweird.f32 %v626_v22 }
 0x3c3   :  { %v607_v24 = vsub.f32 1.0, %v606_v23 }
 0x3c4   :  { %v639_v49 = vor.u32 1.1754944e-38, %v638_v47  ;;  %vm637_vm14 = vcmp.eq.f32.partialorder %v636_v11, 8.507059e+37 }
 0x3c5   :  { %v608_v39 = vmul.f32 %v876_v21, %v607_v24 }
 0x3c7   :  { %v609_v41 = vadd.f32 %v876_v21, %v608_v39 }
 0x3c8   :  { %v878_v42 = vpop.eup %877 }
 0x3c9   :  { %v613_v44 = vsel %vm612_vm9, %v876_v21, %v609_v41  ;;  %v628_v45 = vmul.f32 %v878_v42, %v626_v22  ;;  %vm633_vm11 = vweird.f32 %v878_v42  ;;  %vm748_vm9 = vcmask 0  }
 0x3ca   :  { %v618_v32 = vsel %vm615_vm10, %v617_v43, %v613_v44  ;;  %vm634_vm13 = vmor %vm632_vm12, %vm633_vm11 }
 0x3cb   :  { %v620_v46 = vsel %vm42_vm0, %v618_v32, 0.0  ;;  %v629_v31 = vsub.f32 1.0, %v628_v45 }
 0x3cc   :  { %621 = vadd.xlane.f32.xlu2 %v620_v46 }
 0x3cd   :  { %v630_v30 = vmul.f32 %v878_v42, %v629_v31 }
 0x3cf   :  { %v631_v48 = vadd.f32 %v878_v42, %v630_v30 }
 0x3d1   :  { %v635_v50 = vsel %vm634_vm13, %v878_v42, %v631_v48 }
 0x3d2   :  { %v640_v51 = vsel %vm637_vm14, %v639_v49, %v635_v50 }
 0x3d3   :  { %v642_v52 = vsel %vm42_vm0, %v640_v51, 0.0 }
 0x3d4   :  { %643 = vadd.xlane.f32.xlu0 %v642_v52 }
 0x42d   :  { %v600_v26 = vpop.xlane.xlu1 %599 }
 0x42e   :  { %v788_v7 = vmul.f32 -1.442695, %v600_v26 }
 0x430   :  { %879 = vpow2.f32 %v788_v7 }
 0x436   :  { %v880_v53 = vpop.eup %879 }
 0x437   :  { %v650_v10 = vadd.f32 1.0, %v880_v53 }
 0x439   :  { %881 = vrcp.f32 %v650_v10  ;;  %v662_v27 = vand.u32 2147483648, %v650_v10  ;;  %v660_v28 = vand.u32 2147483647, %v650_v10  ;;  %vm656_vm1 = vweird.f32 %v650_v10 }
 0x43b   :  { %v663_v1 = vor.u32 1.1754944e-38, %v662_v27  ;;  %vm661_vm3 = vcmp.eq.f32.partialorder %v660_v28, 8.507059e+37 }
 0x43f   :  { %v882_v61 = vpop.eup %881  ;;  %v622_v59 = vpop.xlane.xlu2 %621 }
 0x440   :  { %v652_v63 = vmul.f32 %v882_v61, %v650_v10  ;;  %vm657_vm15 = vweird.f32 %v882_v61  ;;  %v645_v55 = vmul.f32 %v622_v59, %v600_v26 }
 0x441   :  { %vm658_vm0 = vmor %vm656_vm1, %vm657_vm15 }
 0x442   :  { %v653_v5 = vsub.f32 1.0, %v652_v63 }
 0x444   :  { %v654_v57 = vmul.f32 %v882_v61, %v653_v5 }
 0x446   :  { %v655_v4 = vadd.f32 %v882_v61, %v654_v57 }
 0x447   :  { %v644_v29 = vpop.xlane.xlu0 %643 }
 0x448   :  { %v646_v3 = vmul.f32 %v645_v55, %v644_v29  ;;  %v659_v6 = vsel %vm658_vm0, %v882_v61, %v655_v4  ;;  %v926_v4 = vmov 8.0  }
 0x449   :  { %v664_v33 = vsel %vm661_vm3, %v663_v1, %v659_v6 }
 0x44a   :  { %v789_v0 = vmul.f32 -1.442695, %v646_v3  ;;  %883 = vlog2.f32 %v664_v33  ;;  %v691_v34 = vsub.f32 1.0, %v664_v33  ;;  %747 = vst.msk [vmem:[%s1354_s6] sm:$0xff] %vm701_vm2, %v664_v33 }
 0x44c   :  { %885 = vpow2.f32 %v789_v0 }
 0x44d   :  { %887 = vlog2.f32 %v691_v34 }
 0x450   :  { %v884_v62 = vpop.eup %883 }
 0x451   :  { %v689_v13 = vmul.f32 0.6931472, %v884_v62 }
 0x452   :  { %v886_v35 = vpop.eup %885 }
 0x453   :  { %v888_v12 = vpop.eup %887  ;;  %v669_v14 = vadd.f32 1.0, %v886_v35  ;;  %v690_v9 = vmax.f32 %v689_v13, -100.0 }
 0x454   :  { %v693_v36 = vmul.f32 0.6931472, %v888_v12 }
 0x455   :  { %889 = vrcp.f32 %v669_v14  ;;  %v695_v15 = vmul.f32 %v690_v9, %v596_v8  ;;  %v681_v21 = vand.u32 2147483648, %v669_v14  ;;  %v679_v24 = vand.u32 2147483647, %v669_v14 }
 0x456   :  { %v694_v58 = vmax.f32 %v693_v36, -100.0  ;;  %vm675_vm5 = vweird.f32 %v669_v14 }
 0x457   :  { %v682_v39 = vor.u32 1.1754944e-38, %v681_v21  ;;  %vm680_vm7 = vcmp.eq.f32.partialorder %v679_v24, 8.507059e+37 }
 0x458   :  { %v697_v16 = vmul.f32 %v696_v37, %v694_v58 }
 0x45a   :  { %v698_v38 = vadd.f32 %v697_v16, %v695_v15 }
 0x45b   :  { %v890_v54 = vpop.eup %889 }
 0x45c   :  { %v671_v18 = vmul.f32 %v890_v54, %v669_v14  ;;  %v699_v2 = vsub.f32 0.0, %v698_v38  ;;  %vm676_vm4 = vweird.f32 %v890_v54 }
 0x45d   :  { %vm677_vm6 = vmor %vm675_vm5, %vm676_vm4 }
 0x45e   :  { %v672_v19 = vsub.f32 1.0, %v671_v18  ;;  %v700_v20 = vmul.f32 %v699_v2, %v687_v17 }
 0x460   :  { %v673_v22 = vmul.f32 %v890_v54, %v672_v19  ;;  %v702_v23 = vsel %vm701_vm2, %v700_v20, 0.0 }
 0x461   :  { %703 = vadd.xlane.f32.xlu2 %v702_v23 }
 0x462   :  { %v674_v25 = vadd.f32 %v890_v54, %v673_v22 }
 0x464   :  { %v678_v40 = vsel %vm677_vm6, %v890_v54, %v674_v25 }
 0x465   :  { %v683_v41 = vsel %vm680_vm7, %v682_v39, %v678_v40 }
 0x466   :  { %891 = vlog2.f32 %v683_v41  ;;  %v724_v42 = vsub.f32 1.0, %v683_v41 }
 0x468   :  { %893 = vlog2.f32 %v724_v42 }
 0x469   :  { %895 = vrcp.f32 %v926_v4 }
 0x46c   :  { %v892_v43 = vpop.eup %891 }
 0x46d   :  { %v722_v44 = vmul.f32 0.6931472, %v892_v43 }
 0x46e   :  { %v894_v45 = vpop.eup %893 }
 0x46f   :  { %v723_v32 = vmax.f32 %v722_v44, -100.0  ;;  %v726_v46 = vmul.f32 0.6931472, %v894_v45  ;;  %v896_v29 = vpop.eup %895 }
 0x470   :  { %v714_v1 = vmul.f32 8.0, %v896_v29  ;;  %vm718_vm8 = vweird.f32 %v896_v29 }
 0x471   :  { %v727_v31 = vmax.f32 %v726_v46, -100.0  ;;  %v728_v47 = vmul.f32 %v723_v32, %v596_v8 }
 0x472   :  { %v715_v3 = vsub.f32 1.0, %v714_v1 }
 0x473   :  { %v729_v30 = vmul.f32 %v727_v31, %v696_v37 }
 0x474   :  { %v716_v6 = vmul.f32 %v896_v29, %v715_v3 }
 0x475   :  { %v730_v11 = vadd.f32 %v729_v30, %v728_v47 }
 0x476   :  { %v717_v33 = vadd.f32 %v896_v29, %v716_v6 }
 0x477   :  { %v731_v48 = vsub.f32 0.0, %v730_v11 }
 0x478   :  { %v719_v34 = vsel %vm718_vm8, %v896_v29, %v717_v33 }
 0x479   :  { %v732_v49 = vmul.f32 %v731_v48, %v687_v17 }
 0x47b   :  { %v733_v50 = vsel %vm701_vm2, %v732_v49, 0.0 }
 0x47c   :  { %734 = vadd.xlane.f32.xlu1 %v733_v50 }
 0x4d4   :  { %v704_v51 = vpop.xlane.xlu2 %703 }
 0x4d5   :  { %v705_v52 = vrot.slane %v704_v51, 4 }
 0x4d7   :  { %v706_v26 = vadd.f32 %v705_v52, %v704_v51 }
 0x4d9   :  { %v707_v7 = vrot.slane %v706_v26, 2 }
 0x4db   :  { %v708_v53 = vadd.f32 %v707_v7, %v706_v26 }
 0x4dd   :  { %v709_v10 = vrot.slane %v708_v53, 1 }
 0x4df   :  { %v710_v61 = vadd.f32 %v709_v10, %v708_v53 }
 0x4e1   :  { %826 = vpush %v710_v61 }
 0x4ef   :  { %v735_v63 = vpop.xlane.xlu1 %734 }
 0x4f0   :  { %v736_v5 = vrot.slane %v735_v63, 4 }
 0x4f2   :  { %v737_v59 = vadd.f32 %v736_v5, %v735_v63 }
 0x4f4   :  { %v738_v27 = vrot.slane %v737_v59, 2 }
 0x4f6   :  { %v739_v57 = vadd.f32 %v738_v27, %v737_v59 }
 0x4f8   :  { %v740_v28 = vrot.slane %v739_v57, 1 }
 0x4fa   :  { %v741_v55 = vadd.f32 %v740_v28, %v739_v57 }
 0x4fc   :  { %828 = vpush %v741_v55 }
 0x512   :  { %s827_s5 = spop %826 }
 0x513   :  { %v712_v0 = vstv %s827_s5 }
 0x514   :  { %v720_v13 = vmul.f32 %v719_v34, %v712_v0 }
 0x52d   :  { %s829_s6 = spop %828 }
 0x52e   :  { %v743_v62 = vstv %s829_s6 }
 0x52f   :  { %v744_v8 = vmul.f32 %v743_v62, %v719_v34 }
 0x531   :  { %v745_v35 = vmul.f32 0.1, %v744_v8 }
 0x533   :  { %v746_v60 = vadd.f32 %v745_v35, %v720_v13 }
 0x535   :  { %749 = vst.msk [vmem:[#allocation3] sm:$0x1] %vm748_vm9, %v746_v60 }
 0x536   :  { %762 = dma.vmem_to_hbm [thread:$0]  %s758_s15, 16, %s760_s18, [#allocation4]  }
 0x537   :  { %921 = dma.done.wait [#allocation4], 16  }
 0x538   :  { %922 = vsyncadd [#allocation4], 4294967280 }
 0x539   :  { %769 = vsyncpa [#allocation4], 1 }

</bundles_post_ra>
